<compile_context>
chip_gen: v6e
topology: v6e:2x2x1
jax: 0.10.0
libtpu: 0.0.40
codegen_flags: <defaults>
</compile_context>

<pallas_src>
import functools

import jax
import jax.numpy as jnp
from jax.experimental import pallas as pl
from jax.experimental.pallas import tpu as pltpu


def _round_up(a: int, b: int) -> int:
    return ((a + b - 1) // b) * b


def _choose_spatial_tile(S: int, *, ts_target: int, lane: int = 128,
                         min_spatial_tiles: int = 1):
    """Pick (tile, padded_S) for the spatial axis.

    Preference order:
      1. largest 128-multiple divisor of S that is <= ts_target (no padding),
         as long as it is big enough to amortize per-step overhead;
      2. a single full-extent tile (no padding; edge stores are masked);
      3. pad S up to a multiple of ts_target (rare ragged fallback).
    """
    if S % lane == 0:
        n = S // lane
        best = 0
        for mult in range(min(ts_target // lane, n), 0, -1):
            if n % mult == 0 and (n // mult) >= min_spatial_tiles:
                best = mult
                break
        threshold = min(ts_target // 8, max(1, S // max(1, min_spatial_tiles)))
        if best and best * lane >= threshold:
            return best * lane, S
    if S <= ts_target:
        return S, S                       # one full-extent tile per image, no pad
    return ts_target, _round_up(S, ts_target)


def _conv_bn_silu_kernel(x_ref, w_ref, bias_ref, o_ref):
    # x_ref: (K, ts) bf16 | w_ref: (C2, K) bf16 | bias_ref: (C2, 1) f32
    # o_ref: (C2, ts) out_dtype
    y = jax.lax.dot_general(                       # MXU matmul, f32 accumulate
        w_ref[...], x_ref[...],
        dimension_numbers=(((1,), (0,)), ((), ())),
        preferred_element_type=jnp.float32)        # (C2, ts)
    y = y + bias_ref[...]                          # folded BatchNorm (scale is in W)
    # SiLU = y * sigmoid(y); the divide goes to the EUP's approximate vrcp slot so
    # the epilogue stays off the VALU/HBM critical path. Math kept in f32 (v5e has
    # no bf16 VPU/EUP and accuracy stays close to the PyTorch f32 path).
    sig = pl.reciprocal(1.0 + jnp.exp(-y), approx=True)
    o_ref[...] = (y * sig).astype(o_ref.dtype)


def focus_conv_pallas(x_kS, w_ck, bias_c1, *, ts, out_dtype):
    """y[b, o, s] = SiLU(sum_k w_ck[o, k] * x_kS[b, k, s] + bias[o])."""
    B, K, S_pad = x_kS.shape
    C2 = w_ck.shape[0]
    assert S_pad % ts == 0
    grid = (B, S_pad // ts)
    return pl.pallas_call(
        _conv_bn_silu_kernel,
        out_shape=jax.ShapeDtypeStruct((B, C2, S_pad), out_dtype),
        grid_spec=pltpu.PrefetchScalarGridSpec(
            num_scalar_prefetch=0,
            grid=grid,
            in_specs=[
                pl.BlockSpec((None, K, ts), lambda b, s: (b, 0, s)),   # activations
                pl.BlockSpec((C2, K), lambda b, s: (0, 0)),            # folded weight
                pl.BlockSpec((C2, 1), lambda b, s: (0, 0)),            # bn bias
            ],
            out_specs=pl.BlockSpec((None, C2, ts), lambda b, s: (b, 0, s)),
        ),
        compiler_params=pltpu.CompilerParams(
            dimension_semantics=("parallel", "parallel"),   # both TCs on v7x
            vmem_limit_bytes=32 * 1024 * 1024,              # safe on 64 MiB v7x VMEM
        ),
    )(x_kS, w_ck, bias_c1)


def space_to_depth_trt(x):
    """Exact replica of the TRTFocus reshape/permute chain (NCHW input)."""
    B, C, H, W = x.shape
    x = x.reshape(B, C, H // 2, 2, W)
    x = x.reshape(B, C, H // 2, 2, W // 2, 2)
    x = jnp.transpose(x, (0, 5, 3, 1, 2, 4))       # (B, w_par, h_par, C, H/2, W/2)
    return x.reshape(B, C * 4, H // 2, W // 2)


def _trt_focus_forward(x, w_oc_ic, gamma, beta, mean, var, eps,
                       ts_target, act_dtype, out_dtype):
    B, C, H, W = x.shape
    assert H % 2 == 0 and W % 2 == 0
    C2 = w_oc_ic.shape[0]
    H2, W2 = H // 2, W // 2
    K, S = 4 * C, H2 * W2

    # Fold BatchNorm (inference): scale into the weight, bias kept in f32.
    # NOTE: bf16 weights/activations/output give ~1e-2 relative error vs the
    # PyTorch f32 conv+BN path (fine for inference; documented for downstream users).
    scale = gamma.astype(jnp.float32) / jnp.sqrt(var.astype(jnp.float32) + eps)
    bias = (beta.astype(jnp.float32) - mean.astype(jnp.float32) * scale).reshape(C2, 1)
    w_folded = (w_oc_ic.reshape(C2, K).astype(jnp.float32)
                * scale[:, None]).astype(act_dtype)                  # (C2, K)

    # One fused XLA HBM pass (under jit): bf16 cast + space-to-depth permute;
    # the (B, K, S) flatten is a free contiguous reshape.
    xsd = space_to_depth_trt(x.astype(act_dtype))                    # (B, 4C, H2, W2)
    x_kS = xsd.reshape(B, K, S)

    # Spatial tiling: lane-dense, big enough to amortize per-step cost, capped so
    # the double-buffered footprint stays well inside v7x VMEM, and >= 2 grid
    # steps when B == 1 so both v7x TensorCores are fed.
    act_b = jnp.dtype(act_dtype).itemsize
    out_b = jnp.dtype(out_dtype).itemsize
    bytes_per_col = 2 * (K * act_b + C2 * out_b)                     # double-buffered
    ts_cap = max(128, ((8 * 1024 * 1024) // bytes_per_col) // 128 * 128)
    ts, S_pad = _choose_spatial_tile(
        S, ts_target=min(ts_target, ts_cap),
        min_spatial_tiles=2 if B == 1 else 1)

    if S_pad != S:                                # rare ragged fallback
        x_kS = jnp.pad(x_kS, ((0, 0), (0, 0), (0, S_pad - S)))

    y = focus_conv_pallas(x_kS, w_folded, bias, ts=ts, out_dtype=out_dtype)
    if S_pad != S:
        y = y[..., :S]
    return y.reshape(B, C2, H2, W2)               # NCHW, no final transpose


@functools.partial(jax.jit,
                   static_argnames=("eps", "ts_target", "act_dtype", "out_dtype"))
def trt_focus_forward(x, w_oc_ic, gamma, beta, mean, var, eps=1e-5, *,
                      ts_target=16384, act_dtype=jnp.bfloat16,
                      out_dtype=jnp.bfloat16):
    return _trt_focus_forward(x, w_oc_ic, gamma, beta, mean, var, eps,
                              ts_target, act_dtype, out_dtype)


if __name__ == "__main__":
    B, C, H, W = 2, 4, 16, 16
    C2 = 32                                       # out channels of Focus' conv

    key = jax.random.PRNGKey(0)
    kx, kw, kg, kb, km, kv = jax.random.split(key, 6)

    x = jax.random.normal(kx, (B, C, H, W), dtype=jnp.float32)
    # Conv2d(4C, C2, kernel_size=1, bias=False) weight, squeezed to (C2, 4C).
    w = jax.random.normal(kw, (C2, 4 * C), dtype=jnp.float32) * 0.1
    gamma = 1.0 + 0.1 * jax.random.normal(kg, (C2,), dtype=jnp.float32)
    beta = 0.1 * jax.random.normal(kb, (C2,), dtype=jnp.float32)
    mean = 0.1 * jax.random.normal(km, (C2,), dtype=jnp.float32)
    var = jnp.abs(jax.random.normal(kv, (C2,), dtype=jnp.float32)) + 0.5

    out = trt_focus_forward(x, w, gamma, beta, mean, var)
    out = jax.block_until_ready(out)
    assert out.shape == (B, C2, H // 2, W // 2)

    # Pure-JAX f32 reference (bf16 storage + bf16 output -> looser tolerance).
    xsd = space_to_depth_trt(x)
    ref = jnp.einsum("bkhw,ok->bohw", xsd, w)
    s = gamma / jnp.sqrt(var + 1e-5)
    ref = ref * s[None, :, None, None] + (beta - mean * s)[None, :, None, None]
    ref = ref * jax.nn.sigmoid(ref)
    out_f32 = out.astype(jnp.float32)
    assert jnp.allclose(out_f32, ref, atol=4e-2, rtol=4e-2), (
        float(jnp.max(jnp.abs(out_f32 - ref))))

    print("KERNEL_OK")
</pallas_src>

<mosaic_0001>
module attributes {stable_mosaic.version = 11 : i64} {
  func.func @_conv_bn_silu_kernel(%arg0: i32, %arg1: i32, %arg2: memref<1x16x64xbf16, #tpu.memory_space<vmem>>, %arg3: memref<32x16xbf16, #tpu.memory_space<vmem>>, %arg4: memref<32x1xf32, #tpu.memory_space<vmem>>, %arg5: memref<1x32x64xbf16, #tpu.memory_space<vmem>>) attributes {dimension_semantics = [#tpu.dimension_semantics<parallel>, #tpu.dimension_semantics<parallel>], iteration_bounds = array<i64: 2, 1>, scalar_prefetch = 0 : i64, scratch_operands = 0 : i64, tpu.core_type = #tpu.core_type<tc>, window_params = [{transform_indices = @transform_0, window_bounds = array<i64: 1, 16, 64>}, {pipeline_mode = #tpu.pipeline_mode<synchronous>, transform_indices = @transform_1, window_bounds = array<i64: 32, 16>}, {pipeline_mode = #tpu.pipeline_mode<synchronous>, transform_indices = @transform_2, window_bounds = array<i64: 32, 1>}, {transform_indices = @transform_3, window_bounds = array<i64: 1, 32, 64>}]} {
    %c0 = arith.constant 0 : index
    %c0_0 = arith.constant 0 : index
    %0 = vector.load %arg3[%c0, %c0_0] : memref<32x16xbf16, #tpu.memory_space<vmem>>, vector<32x16xbf16>
    %c0_1 = arith.constant 0 : index
    %c0_2 = arith.constant 0 : index
    %c0_3 = arith.constant 0 : index
    %1 = vector.load %arg2[%c0_1, %c0_2, %c0_3] : memref<1x16x64xbf16, #tpu.memory_space<vmem>>, vector<1x16x64xbf16>
    %2 = vector.shape_cast %1 : vector<1x16x64xbf16> to vector<16x64xbf16>
    %cst = arith.constant dense<0.000000e+00> : vector<32x64xf32>
    %3 = tpu.matmul %0, %2, %cst {dimension_numbers = #tpu.dot_dimension_numbers<[1], [0], [0], [1], [0, 0, 1, 1], [], []>} : vector<32x16xbf16>, vector<16x64xbf16>, vector<32x64xf32> -> vector<32x64xf32>
    %c0_4 = arith.constant 0 : index
    %c0_5 = arith.constant 0 : index
    %4 = vector.load %arg4[%c0_4, %c0_5] : memref<32x1xf32, #tpu.memory_space<vmem>>, vector<32x1xf32>
    %5 = vector.broadcast %4 : vector<32x1xf32> to vector<32x64xf32>
    %6 = arith.addf %3, %5 : vector<32x64xf32>
    %cst_6 = arith.constant 0.000000e+00 : f32
    %7 = vector.broadcast %cst_6 : f32 to vector<32x64xf32>
    %8 = arith.subf %7, %6 : vector<32x64xf32>
    %9 = math.exp %8 : vector<32x64xf32>
    %cst_7 = arith.constant 1.000000e+00 : f32
    %10 = vector.broadcast %cst_7 : f32 to vector<32x64xf32>
    %11 = arith.addf %10, %9 : vector<32x64xf32>
    %12 = tpu.reciprocal %11 {approx = true} : vector<32x64xf32> -> vector<32x64xf32>
    %13 = arith.mulf %6, %12 : vector<32x64xf32>
    %14 = arith.truncf %13 : vector<32x64xf32> to vector<32x64xbf16>
    %c0_8 = arith.constant 0 : index
    %c0_9 = arith.constant 0 : index
    %c0_10 = arith.constant 0 : index
    %15 = vector.load %arg5[%c0_8, %c0_9, %c0_10] : memref<1x32x64xbf16, #tpu.memory_space<vmem>>, vector<1x32x64xbf16>
    %16 = vector.shape_cast %15 : vector<1x32x64xbf16> to vector<32x64xbf16>
    %17 = vector.shape_cast %14 : vector<32x64xbf16> to vector<1x32x64xbf16>
    tpu.vector_store %arg5[%c0_8, %c0_9, %c0_10], %17 {strides = array<i32>} : memref<1x32x64xbf16, #tpu.memory_space<vmem>>, vector<1x32x64xbf16>,
    return
  }
  func.func @transform_0(%arg0: i32, %arg1: i32) -> (i32, i32, i32) {
    %c0_i32 = arith.constant 0 : i32
    %c0_i32_0 = arith.constant 0 : i32
    return %arg0, %c0_i32, %arg1 : i32, i32, i32
  }
  func.func @transform_1(%arg0: i32, %arg1: i32) -> (i32, i32) {
    %c0_i32 = arith.constant 0 : i32
    %c0_i32_0 = arith.constant 0 : i32
    %c0_i32_1 = arith.constant 0 : i32
    return %c0_i32, %c0_i32_0 : i32, i32
  }
  func.func @transform_2(%arg0: i32, %arg1: i32) -> (i32, i32) {
    %c0_i32 = arith.constant 0 : i32
    %c0_i32_0 = arith.constant 0 : i32
    %c0_i32_1 = arith.constant 0 : i32
    return %c0_i32, %c0_i32_0 : i32, i32
  }
  func.func @transform_3(%arg0: i32, %arg1: i32) -> (i32, i32, i32) {
    %c0_i32 = arith.constant 0 : i32
    %c0_i32_0 = arith.constant 0 : i32
    return %arg0, %c0_i32, %arg1 : i32, i32, i32
  }
}

</mosaic_0001>

<bundles_post_ra>
// kernel: trt_focus_forward.1
= control target key start
LH: loop header
LB: loop body
LE: loop exit
PB: predicated region body
PF: predicated region fallthrough
CT: control target
= control target key end

     0   :  { %s559_s12 = smov 0   ;;  %s561_s13 = smov 0   ;;  %s616_s0 = inlined_call_operand.vmem [shape: bf16[2,16,64], index: 0, kind: input, shape index: {}]   ;;  %s617_s1 = inlined_call_operand.vmem [shape: bf16[32,16], index: 1, kind: input, shape index: {}]   ;;  %s618_s2 = inlined_call_operand.vmem [shape: f32[32,1], index: 2, kind: input, shape index: {}]   ;;  %s619_s3 = inlined_call_operand.vmem [shape: bf16[2,32,64], index: 3, kind: output, shape index: {}]  }
   0x1   :  { %s563_s14 = smov 0  }
   0x2 LB: > { %s25_s15 = sadd.s32 1, %s532_s13  ;;  %p437_p0 = scmp.ge.s32.totalorder %s536_s14, 1  ;;  %s536_s14 = sphi %s563_s14, %s13_s14   ;;  %s532_s13 = sphi %s561_s13, %s621_s13   ;;  %s528_s12 = sphi %s559_s12, %s620_s12  }
   0x3   : > { %p27_p1 = scmp.ge.s32.totalorder %s25_s15, 2  ;;  %p156_p2 = scmp.lt.s32.totalorder %s536_s14, 3 }
   0x5   : > { %s623_s15 = smov (%p27_p1, %s25_s15), 0  ;;  %p157_p3 = pnand %p437_p0, %p156_p2 }
   0x6   : > { %p186_p4 = scmp.lt.s32.totalorder (!%p157_p3), %s528_s12, 1 }
   0x7   : > { %160 = sbr.rel (%p157_p3) target bundleno = 260 (0x104), region = 32 }
   0xc   : > { %v496_v0 = vld [vmem:[%s617_s1] sm:$0xff]   ;;  %vm249_vm0 = vcmask 130048   ;;  %s625_s12 = smov (!%p186_p4, %s528_s12), 1  ;;  %v211_v1 = vld [vmem:[%s618_s2 + $0x10] sm:$0xff]  ;;  %v538_v3 = vmov 0   ;;  %v212_v4 = vld [vmem:[%s618_s2 + $0x18] sm:$0xff] }
   0xd   : > { %464 = vmatprep.mubr.msk.bf16.mxu0 %vm249_vm0, %v496_v0  ;;  %v209_v2 = vld [vmem:[%s618_s2] sm:$0xff]  ;;  %494 = vset.pattern.permute.xlu1 %v538_v3  ;;  %s453_s22 = sshll.u32 %s625_s12, 3  ;;  %v210_v5 = vld [vmem:[%s618_s2 + $0x8] sm:$0xff]  ;;  %s454_s5 = sshll.u32 %s625_s12, 4  ;;  %vm345_vm1 = vcmask 519168  }
   0xe   : > { %493 = vset.pattern.permute.xlu0 %v538_v3  ;;  %225 = vperm.xlu1 %494, %v211_v1   ;;  %s193_s25 = scalar_lea.vmem %s616_s0, %s453_s22  ;;  %v497_v7 = vld [vmem:[%s617_s1 + $0x8] sm:$0xff]   ;;  %s201_s8 = scalar_lea.vmem %s619_s3, %s454_s5 }
   0xf   : > { %215 = vperm.xlu0 %493, %v209_v2   ;;  %v495_v6 = vld [vmem:[%s193_s25] sm:$0xff]  }
  0x10   : > { %462 = vmatprep.subr.bf16.mxu0 %v495_v6 }
  0x11   : > { %463 = vmatpush3.bf16.msra.mxu0 %v495_v6 }
  0x12   : > { %230 = vperm.xlu1 %494, %v212_v4  }
  0x13   : > { %220 = vperm.xlu0 %493, %v210_v5  }
  0x14   : > { %465 = vmatmul.mubr.msk.bf16.vlgmr.msra.gmra.mxu0 %vm249_vm0, %v497_v7 }
  0x89   : > { %v226_v8 = vpop.permute.xlu1 %225 }
  0x8a   : > { %v216_v9 = vpop.permute.xlu0 %215 }
  0x8d   : > { %v231_v15 = vpop.permute.xlu1 %230 }
  0x8e   : > { %v221_v20 = vpop.permute.xlu0 %220 }
  0xd4   : > { %v466_v10 = vpop.f32.mrf.mxu0 }
  0xd5   : > { %v299_v11 = vadd.f32 %v466_v10, %v226_v8 }
  0xd6   : > { %v290_v12 = vpop.f32.mrf.mxu0 }
  0xd7   : > { %v307_v13 = vsub.f32 0.0, %v299_v11  ;;  %v291_v14 = vadd.f32 %v290_v12, %v216_v9 }
  0xd8   : > { %v467_v16 = vpop.f32.mrf.mxu0 }
  0xd9   : > { %v313_v17 = vmul.f32 1.442695, %v307_v13  ;;  %v305_v18 = vsub.f32 0.0, %v291_v14  ;;  %v302_v19 = vadd.f32 %v467_v16, %v231_v15 }
  0xda   : > { %v293_v21 = vpop.f32.mrf.mxu0 }
  0xdb   : > { %498 = vpow2.f32 %v313_v17  ;;  %v309_v22 = vmul.f32 1.442695, %v305_v18  ;;  %v308_v23 = vsub.f32 0.0, %v302_v19  ;;  %v294_v24 = vadd.f32 %v293_v21, %v221_v20 }
  0xdd   : > { %500 = vpow2.f32 %v309_v22  ;;  %v315_v25 = vmul.f32 1.442695, %v308_v23  ;;  %v306_v26 = vsub.f32 0.0, %v294_v24 }
  0xdf   : > { %502 = vpow2.f32 %v315_v25  ;;  %v311_v27 = vmul.f32 1.442695, %v306_v26 }
  0xe1   : > { %504 = vpow2.f32 %v311_v27 }
  0xe8   : > { %v499_v28 = vpop.eup %498 }
  0xe9   : > { %v319_v29 = vadd.f32 1.0, %v499_v28 }
  0xea   : > { %v501_v30 = vpop.eup %500 }
  0xeb   : > { %506 = vrcp.f32 %v319_v29  ;;  %v317_v31 = vadd.f32 1.0, %v501_v30 }
  0xec   : > { %v503_v32 = vpop.eup %502 }
  0xed   : > { %508 = vrcp.f32 %v317_v31  ;;  %v320_v33 = vadd.f32 1.0, %v503_v32 }
  0xee   : > { %v505_v34 = vpop.eup %504 }
  0xef   : > { %510 = vrcp.f32 %v320_v33  ;;  %v318_v35 = vadd.f32 1.0, %v505_v34 }
  0xf1   : > { %512 = vrcp.f32 %v318_v35 }
  0xf8   : > { %v507_v36 = vpop.eup %506 }
  0xf9   : > { %v327_v37 = vmul.f32 %v507_v36, %v299_v11 }
  0xfa   : > { %v509_v38 = vpop.eup %508 }
  0xfb   : > { %v457_v39 = vpack.c.bf16 %v327_v37, %v327_v37  ;;  %v325_v40 = vmul.f32 %v509_v38, %v291_v14 }
  0xfc   : > { %v511_v41 = vpop.eup %510 }
  0xfd   : > { %348 = vst.msk [vmem:[%s201_s8 + $0x8] sm:$0xf] %vm345_vm1, %v457_v39  ;;  %v455_v42 = vpack.c.bf16 %v325_v40, %v325_v40  ;;  %v328_v43 = vmul.f32 %v511_v41, %v302_v19 }
  0xfe   : > { %v513_v44 = vpop.eup %512 }
  0xff   : > { %346 = vst.msk [vmem:[%s201_s8] sm:$0xf] %vm345_vm1, %v455_v42  ;;  %v458_v45 = vpack.c.bf16 %v328_v43, %v328_v43  ;;  %v326_v46 = vmul.f32 %v513_v44, %v294_v24 }
 0x101   : > { %349 = vst.msk [vmem:[%s201_s8 + $0xc] sm:$0xf] %vm345_vm1, %v458_v45  ;;  %v456_v47 = vpack.c.bf16 %v326_v46, %v326_v46 }
 0x103   : > { %347 = vst.msk [vmem:[%s201_s8 + $0x4] sm:$0xf] %vm345_vm1, %v456_v47 }
 0x104 PF: > { %s13_s14 = sadd.s32 1, %s536_s14   ;;  %s620_s12 = smov %s532_s13 }
 0x105   : > { %p10_p5 = scmp.ge.s32.totalorder %s13_s14, 4   ;;  %s621_s13 = smov %s623_s15 }
 0x107   :  { %12 = sbr.rel (!%p10_p5) target bundleno = 2 (0x2), region = 62 }

</bundles_post_ra>
